<compile_context>
chip_gen: v7x
topology: tpu7x:2x2x1
jax: 0.10.0
libtpu: 0.0.40
codegen_flags: <defaults>
</compile_context>

<pallas_src>
import functools

import jax
import jax.numpy as jnp
from jax import lax
from jax.experimental import pallas as pl
from jax.experimental.pallas import tpu as pltpu


LEAKY_SLOPE = 0.01  # nn.LeakyReLU default negative_slope
BN_EPS = 1e-5       # nn.BatchNorm2d default eps


def _conv_bn_lrelu_kernel(x_ref, w_ref, shift_ref, o_ref, *,
                          kh, oh, ow, stride, block_b, cout_r8):
    """block_b images: out = LeakyReLU(conv(x, w_bn_folded) + shift), channel-major store.

    x_ref:     (block_b, Hp, OW, KW*Cin)  bf16  (W-taps pre-interleaved into lanes)
    w_ref:     (KH, KW*Cin, cout_r8)      bf16  (BN scale folded in)
    shift_ref: (1, cout_r8)               f32   (BN shift)
    o_ref:     (block_b, cout_r8, OH*OW)  f32
    """
    xb = x_ref[...]
    kwc = xb.shape[-1]
    ohw = oh * ow

    # kh small matmuls accumulated in registers (no VMEM accumulator round-trips).
    # Only the outer H axis is sliced, which is layout-free; the W offsets were handled
    # by the wrapper-side interleave.
    y = None
    for i in range(kh):                                   # static, fully unrolled
        if stride == 1:
            win = xb[:, i:i + oh]                         # (block_b, OH, OW, KW*Cin)
        else:
            win = lax.slice(
                xb, (0, i, 0, 0),
                (block_b, i + stride * (oh - 1) + 1, ow, kwc),
                (1, stride, 1, 1))
        slab = win.reshape(block_b * ohw, kwc)            # OW % 8 == 0 -> trivial merge
        part = jnp.dot(slab, w_ref[i], preferred_element_type=jnp.float32)
        y = part if y is None else y + part

    y = y + shift_ref[...]                                # BN shift (scale already in weights)
    y = jnp.where(y >= 0, y, LEAKY_SLOPE * y)             # LeakyReLU
    # Channel-major, lane-dense store (lanes = OH*OW); only cout_r8 channels are written.
    o_ref[...] = jnp.transpose(y.reshape(block_b, ohw, cout_r8),
                               (0, 2, 1)).astype(o_ref.dtype)


@functools.partial(jax.jit, static_argnames=("stride", "padding", "block_batch"))
def conv_layer_forward(x_nchw, weight, bn_gamma, bn_beta, bn_mean, bn_var,
                       *, stride, padding, block_batch=None):
    """Forward pass of ConvLayer (inference mode).

    x_nchw:  (N, Cin, H, W)       float32
    weight:  (Cout, Cin, KH, KW)  float32  (PyTorch Conv2d layout, bias=False)
    bn_*:    (Cout,)              float32
    returns: (N, Cout, OH, OW)    float32
    """
    n, cin, h, w = x_nchw.shape
    cout, _, kh, kw = weight.shape
    oh = (h + 2 * padding - kh) // stride + 1
    ow = (w + 2 * padding - kw) // stride + 1
    ohw = oh * ow
    hp = h + 2 * padding
    # Sublane-round only (8), not 128: avoids 16x-padded output HBM writeback at Cout=8.
    cout_r8 = ((cout + 7) // 8) * 8

    if block_batch is None:
        # Amortize per-grid-step overhead but keep >= 2 grid steps so the "parallel"
        # batch axis can still split across TensorCores (v7x megacore).
        block_batch = max(1, n // 2)
        while n % block_batch:
            block_batch -= 1

    # Fold BatchNorm running stats: scale goes into the weights, shift stays in-kernel.
    scale = bn_gamma / jnp.sqrt(bn_var + BN_EPS)          # (Cout,)
    shift = bn_beta - bn_mean * scale                     # (Cout,)

    # Weights: (Cout,Cin,KH,KW) -> (KH, KW*Cin, cout_r8), BN-scaled, bf16.
    w_t = jnp.transpose(weight, (2, 3, 1, 0)) * scale     # (KH, KW, Cin, Cout) f32
    w_t = jnp.pad(w_t, ((0, 0), (0, 0), (0, 0), (0, cout_r8 - cout)))
    w_stack = w_t.reshape(kh, kw * cin, cout_r8).astype(jnp.bfloat16)

    shift_pad = jnp.pad(shift, (0, cout_r8 - cout)).reshape(1, cout_r8).astype(jnp.float32)

    # Input: NCHW -> NHWC, bf16 (halves input DMA bytes), spatial zero-pad, then interleave
    # the kw W-taps into the lane dim: x_il[n,h,ow,j*Cin+c] = x_pad[n,h,stride*ow+j,c].
    # In-kernel slices are then only along the outer H axis.
    x_nhwc = jnp.transpose(x_nchw, (0, 2, 3, 1)).astype(jnp.bfloat16)
    x_pad = jnp.pad(x_nhwc, ((0, 0), (padding, padding), (padding, padding), (0, 0)))
    cols = [x_pad[:, :, j:j + stride * (ow - 1) + 1:stride, :] for j in range(kw)]
    x_il = jnp.concatenate(cols, axis=-1)                 # (N, Hp, OW, KW*Cin)

    kernel = functools.partial(_conv_bn_lrelu_kernel, kh=kh, oh=oh, ow=ow,
                               stride=stride, block_b=block_batch, cout_r8=cout_r8)

    out_cm = pl.pallas_call(
        kernel,
        out_shape=jax.ShapeDtypeStruct((n, cout_r8, ohw), jnp.float32),
        grid_spec=pltpu.PrefetchScalarGridSpec(
            num_scalar_prefetch=0,
            grid=(n // block_batch,),
            in_specs=[
                pl.BlockSpec((block_batch, hp, ow, kw * cin), lambda b: (b, 0, 0, 0)),
                pl.BlockSpec((kh, kw * cin, cout_r8), lambda b: (0, 0, 0)),
                pl.BlockSpec((1, cout_r8), lambda b: (0, 0)),
            ],
            out_specs=pl.BlockSpec((block_batch, cout_r8, ohw), lambda b: (b, 0, 0)),
        ),
        compiler_params=pltpu.CompilerParams(
            dimension_semantics=("parallel",),            # megacore-shard the batch on v7x
            # Tiny tiles at these shapes; raise toward ~96 MiB on v5e/v6e (cap ~48 MiB on
            # v7x) only if batch/row tiles are enlarged for production sizes.
            vmem_limit_bytes=32 * 1024 * 1024,
        ),
    )(x_il, w_stack, shift_pad)

    # Dropout: identity in eval mode.  # TODO(synk): training-mode dropout mask not implemented
    # Channel-major output -> NCHW: slice off channel rounding and reshape (no HBM transpose).
    return out_cm[:, :cout, :].reshape(n, cout, oh, ow)


if __name__ == "__main__":
    key = jax.random.PRNGKey(0)
    k_x, k_w = jax.random.split(key)

    # ConvLayer(in_channels=4, out_channels=8, kernel_size=3, stride=1, padding=1, dropout_rate=0.1)
    N, Cin, H, W = 2, 4, 16, 16
    Cout, KH, KW = 8, 3, 3
    stride, padding = 1, 1

    x = jax.random.normal(k_x, (N, Cin, H, W), dtype=jnp.float32)
    weight = jax.random.normal(k_w, (Cout, Cin, KH, KW), dtype=jnp.float32) * 0.1

    # Deterministic BN parameters (fresh nn.BatchNorm2d state).
    bn_gamma = jnp.ones((Cout,), jnp.float32)
    bn_beta = jnp.zeros((Cout,), jnp.float32)
    bn_mean = jnp.zeros((Cout,), jnp.float32)
    bn_var = jnp.ones((Cout,), jnp.float32)

    out = conv_layer_forward(x, weight, bn_gamma, bn_beta, bn_mean, bn_var,
                             stride=stride, padding=padding)
    out = jax.block_until_ready(out)

    # Reference: same math path as the kernel (BN scale folded into weight, bf16-rounded
    # operands, f32 accumulation), so a tight tolerance is valid despite the bf16 MXU path.
    scale = bn_gamma / jnp.sqrt(bn_var + BN_EPS)
    shift = bn_beta - bn_mean * scale
    w_fold = (weight * scale[:, None, None, None]).astype(jnp.bfloat16).astype(jnp.float32)
    x_q = x.astype(jnp.bfloat16).astype(jnp.float32)
    ref = lax.conv_general_dilated(
        x_q, w_fold, window_strides=(stride, stride),
        padding=((padding, padding), (padding, padding)),
        dimension_numbers=("NCHW", "OIHW", "NCHW"))
    ref = ref + shift.reshape(1, Cout, 1, 1)
    ref = jnp.where(ref >= 0, ref, LEAKY_SLOPE * ref)

    assert out.shape == (N, Cout, H, W), out.shape
    err = float(jnp.max(jnp.abs(out - ref)))
    assert jnp.allclose(out, ref, atol=1e-3, rtol=1e-3), err

    print("KERNEL_OK")
</pallas_src>

<mosaic_0001>
module attributes {stable_mosaic.version = 11 : i64} {
  func.func @_conv_bn_lrelu_kernel(%arg0: i32, %arg1: memref<1x18x16x12xbf16, #tpu.memory_space<vmem>>, %arg2: memref<3x12x8xbf16, #tpu.memory_space<vmem>>, %arg3: memref<1x8xf32, #tpu.memory_space<vmem>>, %arg4: memref<1x8x256xf32, #tpu.memory_space<vmem>>) attributes {dimension_semantics = [#tpu.dimension_semantics<parallel>], iteration_bounds = array<i64: 2>, scalar_prefetch = 0 : i64, scratch_operands = 0 : i64, tpu.core_type = #tpu.core_type<tc>, window_params = [{transform_indices = @transform_0, window_bounds = array<i64: 1, 18, 16, 12>}, {pipeline_mode = #tpu.pipeline_mode<synchronous>, transform_indices = @transform_1, window_bounds = array<i64: 3, 12, 8>}, {pipeline_mode = #tpu.pipeline_mode<synchronous>, transform_indices = @transform_2, window_bounds = array<i64: 1, 8>}, {transform_indices = @transform_3, window_bounds = array<i64: 1, 8, 256>}]} {
    %c0 = arith.constant 0 : index
    %c0_0 = arith.constant 0 : index
    %c0_1 = arith.constant 0 : index
    %c0_2 = arith.constant 0 : index
    %0 = vector.load %arg1[%c0, %c0_0, %c0_1, %c0_2] : memref<1x18x16x12xbf16, #tpu.memory_space<vmem>>, vector<1x18x16x12xbf16>
    %1 = vector.extract_strided_slice %0 {offsets = [0, 0, 0, 0], sizes = [1, 16, 16, 12], strides = [1, 1, 1, 1]} : vector<1x18x16x12xbf16> to vector<1x16x16x12xbf16>
    %2 = vector.shape_cast %1 : vector<1x16x16x12xbf16> to vector<256x12xbf16>
    %c0_3 = arith.constant 0 : index
    %c0_4 = arith.constant 0 : index
    %c0_5 = arith.constant 0 : index
    %3 = vector.load %arg2[%c0_3, %c0_4, %c0_5] : memref<3x12x8xbf16, #tpu.memory_space<vmem>>, vector<1x12x8xbf16>
    %4 = vector.shape_cast %3 : vector<1x12x8xbf16> to vector<12x8xbf16>
    %cst = arith.constant dense<0.000000e+00> : vector<256x8xf32>
    %5 = tpu.matmul %2, %4, %cst {dimension_numbers = #tpu.dot_dimension_numbers<[1], [0], [0], [1], [0, 0, 1, 1], [], []>} : vector<256x12xbf16>, vector<12x8xbf16>, vector<256x8xf32> -> vector<256x8xf32>
    %6 = vector.extract_strided_slice %0 {offsets = [0, 1, 0, 0], sizes = [1, 16, 16, 12], strides = [1, 1, 1, 1]} : vector<1x18x16x12xbf16> to vector<1x16x16x12xbf16>
    %7 = vector.shape_cast %6 : vector<1x16x16x12xbf16> to vector<256x12xbf16>
    %c1 = arith.constant 1 : index
    %c0_6 = arith.constant 0 : index
    %c0_7 = arith.constant 0 : index
    %8 = vector.load %arg2[%c1, %c0_6, %c0_7] : memref<3x12x8xbf16, #tpu.memory_space<vmem>>, vector<1x12x8xbf16>
    %9 = vector.shape_cast %8 : vector<1x12x8xbf16> to vector<12x8xbf16>
    %cst_8 = arith.constant dense<0.000000e+00> : vector<256x8xf32>
    %10 = tpu.matmul %7, %9, %cst_8 {dimension_numbers = #tpu.dot_dimension_numbers<[1], [0], [0], [1], [0, 0, 1, 1], [], []>} : vector<256x12xbf16>, vector<12x8xbf16>, vector<256x8xf32> -> vector<256x8xf32>
    %11 = arith.addf %5, %10 : vector<256x8xf32>
    %12 = vector.extract_strided_slice %0 {offsets = [0, 2, 0, 0], sizes = [1, 16, 16, 12], strides = [1, 1, 1, 1]} : vector<1x18x16x12xbf16> to vector<1x16x16x12xbf16>
    %13 = vector.shape_cast %12 : vector<1x16x16x12xbf16> to vector<256x12xbf16>
    %c2 = arith.constant 2 : index
    %c0_9 = arith.constant 0 : index
    %c0_10 = arith.constant 0 : index
    %14 = vector.load %arg2[%c2, %c0_9, %c0_10] : memref<3x12x8xbf16, #tpu.memory_space<vmem>>, vector<1x12x8xbf16>
    %15 = vector.shape_cast %14 : vector<1x12x8xbf16> to vector<12x8xbf16>
    %cst_11 = arith.constant dense<0.000000e+00> : vector<256x8xf32>
    %16 = tpu.matmul %13, %15, %cst_11 {dimension_numbers = #tpu.dot_dimension_numbers<[1], [0], [0], [1], [0, 0, 1, 1], [], []>} : vector<256x12xbf16>, vector<12x8xbf16>, vector<256x8xf32> -> vector<256x8xf32>
    %17 = arith.addf %11, %16 : vector<256x8xf32>
    %c0_12 = arith.constant 0 : index
    %c0_13 = arith.constant 0 : index
    %18 = vector.load %arg3[%c0_12, %c0_13] : memref<1x8xf32, #tpu.memory_space<vmem>>, vector<1x8xf32>
    %19 = vector.broadcast %18 : vector<1x8xf32> to vector<256x8xf32>
    %20 = arith.addf %17, %19 : vector<256x8xf32>
    %cst_14 = arith.constant 0.000000e+00 : f32
    %21 = vector.broadcast %cst_14 : f32 to vector<256x8xf32>
    %22 = arith.cmpf oge, %20, %21 : vector<256x8xf32>
    %cst_15 = arith.constant 0.00999999977 : f32
    %23 = vector.broadcast %cst_15 : f32 to vector<256x8xf32>
    %24 = arith.mulf %23, %20 : vector<256x8xf32>
    %25 = arith.select %22, %20, %24 : vector<256x8xi1>, vector<256x8xf32>
    %26 = vector.shape_cast %25 : vector<256x8xf32> to vector<1x256x8xf32>
    %27 = tpu.transpose %26, [0, 2, 1] : vector<1x256x8xf32> -> vector<1x8x256xf32>
    %c0_16 = arith.constant 0 : index
    %c0_17 = arith.constant 0 : index
    %c0_18 = arith.constant 0 : index
    %28 = vector.load %arg4[%c0_16, %c0_17, %c0_18] : memref<1x8x256xf32, #tpu.memory_space<vmem>>, vector<1x8x256xf32>
    tpu.vector_store %arg4[%c0_16, %c0_17, %c0_18], %27 {strides = array<i32>} : memref<1x8x256xf32, #tpu.memory_space<vmem>>, vector<1x8x256xf32>,
    return
  }
  func.func @transform_0(%arg0: i32) -> (i32, i32, i32, i32) {
    %c0_i32 = arith.constant 0 : i32
    %c0_i32_0 = arith.constant 0 : i32
    %c0_i32_1 = arith.constant 0 : i32
    %c0_i32_2 = arith.constant 0 : i32
    return %arg0, %c0_i32, %c0_i32_0, %c0_i32_1 : i32, i32, i32, i32
  }
  func.func @transform_1(%arg0: i32) -> (i32, i32, i32) {
    %c0_i32 = arith.constant 0 : i32
    %c0_i32_0 = arith.constant 0 : i32
    %c0_i32_1 = arith.constant 0 : i32
    %c0_i32_2 = arith.constant 0 : i32
    return %c0_i32, %c0_i32_0, %c0_i32_1 : i32, i32, i32
  }
  func.func @transform_2(%arg0: i32) -> (i32, i32) {
    %c0_i32 = arith.constant 0 : i32
    %c0_i32_0 = arith.constant 0 : i32
    %c0_i32_1 = arith.constant 0 : i32
    return %c0_i32, %c0_i32_0 : i32, i32
  }
  func.func @transform_3(%arg0: i32) -> (i32, i32, i32) {
    %c0_i32 = arith.constant 0 : i32
    %c0_i32_0 = arith.constant 0 : i32
    %c0_i32_1 = arith.constant 0 : i32
    return %arg0, %c0_i32, %c0_i32_0 : i32, i32, i32
  }
}

</mosaic_0001>

<bundles_post_ra>
// kernel: conv_layer_forward.1
= control target key start
LH: loop header
LB: loop body
LE: loop exit
PB: predicated region body
PF: predicated region fallthrough
CT: control target
= control target key end

     0   :  { %s1523_s12 = smov 0   ;;  %s1703_s0 = inlined_call_operand.vmem [shape: bf16[2,18,16,12], index: 0, kind: input, shape index: {}]   ;;  %s1704_s1 = inlined_call_operand.vmem [shape: bf16[3,12,8], index: 1, kind: input, shape index: {}]   ;;  %s1705_s2 = inlined_call_operand.vmem [shape: f32[1,8], index: 2, kind: input, shape index: {}]   ;;  %s1706_s3 = inlined_call_operand.vmem [shape: f32[2,8,256], index: 3, kind: output, shape index: {}]  }
   0x1 LB: > { %s1157_s13 = sadd.s32 4294967295, %s1501_s12   ;;  %p1161_p0 = scmp.ge.s32.totalorder %s1501_s12, 1  ;;  %s1501_s12 = sphi %s1523_s12, %s13_s12  }
   0x2   : > { %p137_p1 = scmp.lt.s32.totalorder %s1501_s12, 3 }
   0x4   : > { %p138_p2 = pnand %p1161_p0, %p137_p1 }
   0x5   : > { %v1474_v0 = vld [vmem:[%s1704_s1 + $0x8] sm:$0x3f] (!%p138_p2)   ;;  %vm347_vm0 = vcmask (!%p138_p2), 1045504   ;;  %p161_p3 = scmp.lt.s32.totalorder (!%p138_p2), %s1157_s13, 1  ;;  %v1475_v1 = vld [vmem:[%s1704_s1] sm:$0x3f] (!%p138_p2)  }
   0x6   : > { %141 = sbr.rel (%p138_p2) target bundleno = 433 (0x1b1), region = 32  ;;  %1461 = vmatprep.subr.msk.bf16.mxu1 (!%p138_p2), %vm347_vm0, %v1474_v0  ;;  %v349_v2 = vsel (!%p138_p2), %vm347_vm0, %v1474_v0, 0  ;;  %v1478_v3 = vld [vmem:[%s1704_s1 + $0x10] sm:$0x3f] (!%p138_p2)   ;;  %1462 = vmatprep.subr.msk.bf16.mxu0 (!%p138_p2), %vm347_vm0, %v1475_v1  ;;  %v526_v4 = vsel (!%p138_p2), %vm347_vm0, %v1475_v1, 0  ;;  %vm298_vm1 = vcmask (!%p138_p2), 97280  }
   0x7   : > { %1294 = vmatpush3.bf16.msra.mxu1 (!%p138_p2), %v349_v2  ;;  %1328 = vmatpush3.bf16.msra.mxu0 (!%p138_p2), %v526_v4  ;;  %v706_v8 = vsel (!%p138_p2), %vm347_vm0, %v1478_v3, 0  ;;  %v1626_v42 = vld [vmem:[%s1705_s2] ss:$0 sm:$0xff] (!%p138_p2) }
   0x8   : > { %1463 = vmatprep.subr.msk.bf16.mxu1 (!%p138_p2), %vm347_vm0, %v1475_v1  ;;  %1464 = vmatprep.subr.msk.bf16.mxu0 (!%p138_p2), %vm347_vm0, %v1478_v3 }
   0xd   : > { %s1708_s13 = smov (!%p161_p3, %s1157_s13), 1 }
   0xe   : > { %s1465_s20 = smul.u32 144, %s1708_s13  ;;  %s1241_s26 = sshll.u32 %s1708_s13, 4 }
   0xf   : > { %s170_s29 = scalar_lea.vmem %s1706_s3, %s1241_s26 }
  0x10   : > { %s1552_s23 = scalar_lea.vmem %s1703_s0, %s1465_s20 }
  0x11   : > { %v1476_v5 = vld [vmem:[%s1552_s23 + $0x8] sm:$0xff]   ;;  %v1477_v6 = vld [vmem:[%s1552_s23] sm:$0xff]   ;;  %v1479_v7 = vld [vmem:[%s1552_s23 + $0x10] sm:$0xff]  }
  0x12   : > { %1295 = vmatprep.mubr.msk.bf16.mxu1 %vm298_vm1, %v1476_v5  ;;  %1329 = vmatprep.mubr.msk.bf16.mxu0 %vm298_vm1, %v1477_v6  ;;  %v1480_v9 = vld [vmem:[%s1552_s23 + $0x18] sm:$0xff]   ;;  %v1481_v10 = vld [vmem:[%s1552_s23 + $0x20] sm:$0xff]   ;;  %v1482_v11 = vld [vmem:[%s1552_s23 + $0x28] sm:$0xff]  }
  0x13   : > { %1296 = vmatmul.mubr.msk.bf16.vlgmr.msra.gmra.mrb[0].mxu1 %vm298_vm1, %v1479_v7  ;;  %1330 = vmatmul.mubr.msk.bf16.vlgmr.msra.gmra.mrb[0].mxu0 %vm298_vm1, %v1476_v5  ;;  %v1483_v12 = vld [vmem:[%s1552_s23 + $0x30] sm:$0xff]   ;;  %v1484_v13 = vld [vmem:[%s1552_s23 + $0x38] sm:$0xff]   ;;  %v1485_v14 = vld [vmem:[%s1552_s23 + $0x40] sm:$0xff]  }
  0x14   : > { %1396 = vmatpush3.bf16.msra.mxu1 %v526_v4  ;;  %1362 = vmatpush3.bf16.msra.mxu0 %v706_v8  ;;  %v1486_v15 = vld [vmem:[%s1552_s23 + $0x48] sm:$0xff]   ;;  %v1487_v16 = vld [vmem:[%s1552_s23 + $0x50] sm:$0xff]   ;;  %v1488_v17 = vld [vmem:[%s1552_s23 + $0x58] sm:$0xff]  }
  0x15   : > { %1299 = vmatprep.mubr.msk.bf16.mxu1 %vm298_vm1, %v1480_v9  ;;  %1333 = vmatprep.mubr.msk.bf16.mxu0 %vm298_vm1, %v1479_v7  ;;  %v1489_v18 = vld [vmem:[%s1552_s23 + $0x60] sm:$0xff]   ;;  %v1490_v19 = vld [vmem:[%s1552_s23 + $0x68] sm:$0xff]   ;;  %v1491_v20 = vld [vmem:[%s1552_s23 + $0x70] sm:$0xff]  }
  0x16   : > { %v1492_v21 = vld [vmem:[%s1552_s23 + $0x78] sm:$0xff]   ;;  %v1493_v22 = vld [vmem:[%s1552_s23 + $0x80] sm:$0xff]   ;;  %v1494_v23 = vld [vmem:[%s1552_s23 + $0x88] sm:$0xff]  }
  0x1b   : > { %1300 = vmatmul.mubr.msk.bf16.gmra.mrb[4].mxu1 %vm298_vm1, %v1481_v10  ;;  %1334 = vmatmul.mubr.msk.bf16.gmra.mrb[4].mxu0 %vm298_vm1, %v1480_v9 }
  0x1c   : > { %1303 = vmatprep.mubr.msk.bf16.mxu1 %vm298_vm1, %v1482_v11  ;;  %1337 = vmatprep.mubr.msk.bf16.mxu0 %vm298_vm1, %v1481_v10 }
  0x23   : > { %1304 = vmatmul.mubr.msk.bf16.gmra.mrb[8].mxu1 %vm298_vm1, %v1483_v12  ;;  %1338 = vmatmul.mubr.msk.bf16.gmra.mrb[8].mxu0 %vm298_vm1, %v1482_v11 }
  0x24   : > { %1307 = vmatprep.mubr.msk.bf16.mxu1 %vm298_vm1, %v1484_v13  ;;  %1341 = vmatprep.mubr.msk.bf16.mxu0 %vm298_vm1, %v1483_v12 }
  0x2b   : > { %1308 = vmatmul.mubr.msk.bf16.gmra.mrb[12].mxu1 %vm298_vm1, %v1485_v14  ;;  %1342 = vmatmul.mubr.msk.bf16.gmra.mrb[12].mxu0 %vm298_vm1, %v1484_v13 }
  0x2c   : > { %1311 = vmatprep.mubr.msk.bf16.mxu1 %vm298_vm1, %v1486_v15  ;;  %1363 = vmatprep.mubr.msk.bf16.mxu0 %vm298_vm1, %v1479_v7 }
  0x33   : > { %1312 = vmatmul.mubr.msk.bf16.gmra.mrb[16].mxu1 %vm298_vm1, %v1487_v16  ;;  %1364 = vmatmul.mubr.msk.bf16.vlgmr.msra.gmra.mrb[0].mxu0 %vm298_vm1, %v1480_v9 }
  0x34   : > { %1315 = vmatprep.mubr.msk.bf16.mxu1 %vm298_vm1, %v1488_v17  ;;  %1367 = vmatprep.mubr.msk.bf16.mxu0 %vm298_vm1, %v1481_v10 }
  0x3b   : > { %1316 = vmatmul.mubr.msk.bf16.gmra.mrb[20].mxu1 %vm298_vm1, %v1489_v18  ;;  %1368 = vmatmul.mubr.msk.bf16.gmra.mrb[4].mxu0 %vm298_vm1, %v1482_v11 }
  0x3c   : > { %1319 = vmatprep.mubr.msk.bf16.mxu1 %vm298_vm1, %v1490_v19  ;;  %1371 = vmatprep.mubr.msk.bf16.mxu0 %vm298_vm1, %v1483_v12 }
  0x43   : > { %1320 = vmatmul.mubr.msk.bf16.gmra.mrb[24].mxu1 %vm298_vm1, %v1491_v20  ;;  %1372 = vmatmul.mubr.msk.bf16.gmra.mrb[8].mxu0 %vm298_vm1, %v1484_v13 }
  0x44   : > { %1323 = vmatprep.mubr.msk.bf16.mxu1 %vm298_vm1, %v1492_v21  ;;  %1375 = vmatprep.mubr.msk.bf16.mxu0 %vm298_vm1, %v1485_v14 }
  0x4b   : > { %1324 = vmatmul.mubr.msk.bf16.gmra.mrb[28].mxu1 %vm298_vm1, %v1493_v22  ;;  %1376 = vmatmul.mubr.msk.bf16.gmra.mrb[12].mxu0 %vm298_vm1, %v1486_v15 }
  0x4c   : > { %1345 = vmatprep.mubr.msk.bf16.mxu1 %vm298_vm1, %v1485_v14  ;;  %1379 = vmatprep.mubr.msk.bf16.mxu0 %vm298_vm1, %v1487_v16 }
  0x53   : > { %1346 = vmatmul.mubr.msk.bf16.vlgmr.msra.gmra.mrb[16].mxu1 %vm298_vm1, %v1486_v15  ;;  %1380 = vmatmul.mubr.msk.bf16.gmra.mrb[16].mxu0 %vm298_vm1, %v1488_v17 }
  0x54   : > { %1349 = vmatprep.mubr.msk.bf16.mxu1 %vm298_vm1, %v1487_v16  ;;  %1383 = vmatprep.mubr.msk.bf16.mxu0 %vm298_vm1, %v1489_v18 }
  0x5b   : > { %1350 = vmatmul.mubr.msk.bf16.gmra.mrb[20].mxu1 %vm298_vm1, %v1488_v17  ;;  %1384 = vmatmul.mubr.msk.bf16.gmra.mrb[20].mxu0 %vm298_vm1, %v1490_v19 }
  0x5c   : > { %1353 = vmatprep.mubr.msk.bf16.mxu1 %vm298_vm1, %v1489_v18  ;;  %1387 = vmatprep.mubr.msk.bf16.mxu0 %vm298_vm1, %v1491_v20 }
  0x63   : > { %1354 = vmatmul.mubr.msk.bf16.gmra.mrb[24].mxu1 %vm298_vm1, %v1490_v19  ;;  %1388 = vmatmul.mubr.msk.bf16.gmra.mrb[24].mxu0 %vm298_vm1, %v1492_v21 }
  0x64   : > { %1357 = vmatprep.mubr.msk.bf16.mxu1 %vm298_vm1, %v1491_v20  ;;  %1391 = vmatprep.mubr.msk.bf16.mxu0 %vm298_vm1, %v1493_v22 }
  0x6b   : > { %1358 = vmatmul.mubr.msk.bf16.gmra.mrb[28].mxu1 %vm298_vm1, %v1492_v21  ;;  %1392 = vmatmul.mubr.msk.bf16.gmra.mrb[28].mxu0 %vm298_vm1, %v1494_v23 }
  0xe6   : > { %v1297_v24 = vpop.f32.mrb[0].mxu1 }
  0xe7   : > { %v385_v25 = vpop.f32.mrb[1].mxu1 }
  0xe8   : > { %v1298_v26 = vpop.f32.mrb[2].mxu1 }
  0xe9   : > { %v388_v27 = vpop.f32.mrb[3].mxu1 }
  0xee   : > { %v1301_v28 = vpop.f32.mrb[4].mxu1 }
  0xef   : > { %v401_v29 = vpop.f32.mrb[5].mxu1 }
  0xf0   : > { %v1302_v30 = vpop.f32.mrb[6].mxu1 }
  0xf1   : > { %v404_v31 = vpop.f32.mrb[7].mxu1 }
  0xf6   : > { %v1305_v32 = vpop.f32.mrb[8].mxu1 }
  0xf7   : > { %v417_v33 = vpop.f32.mrb[9].mxu1 }
  0xf8   : > { %v1306_v34 = vpop.f32.mrb[10].mxu1 }
  0xf9   : > { %v420_v35 = vpop.f32.mrb[11].mxu1 }
  0xfe   : > { %v1309_v36 = vpop.f32.mrb[12].mxu1 }
  0xff   : > { %v433_v37 = vpop.f32.mrb[13].mxu1 }
 0x100   : > { %v1310_v38 = vpop.f32.mrb[14].mxu1 }
 0x101   : > { %v1621_v39 = vpop.f32.mrb[15].mxu1 }
 0x106   : > { %v1365_v40 = vpop.f32.mrb[0].mxu0 }
 0x107   : > { %v1397_v41 = vadd.f32 %v1365_v40, %v1297_v24  ;;  %v742_v43 = vpop.f32.mrb[1].mxu0 }
 0x108   : > { %v1398_v44 = vadd.f32 %v742_v43, %v385_v25  ;;  %v1366_v45 = vpop.f32.mrb[2].mxu0 }
 0x109   : > { %v1399_v46 = vadd.f32 %v1366_v45, %v1298_v26  ;;  %v745_v47 = vpop.f32.mrb[3].mxu0  ;;  %v910_v52 = vadd.f32 %v1397_v41, %v1626_v42 }
 0x10a   : > { %v908_v48 = vadd.f32 %v1398_v44, %v1626_v42  ;;  %v1400_v49 = vadd.f32 %v745_v47, %v388_v27 }
 0x10b   : > { %v911_v62 = vadd.f32 %v1399_v46, %v1626_v42  ;;  %v974_v1 = vmul.f32 0.01, %v910_v52  ;;  %vm942_vm4 = vcmp.ge.f32.partialorder %v910_v52, 0.0 }
 0x10c   : > { %v909_v50 = vadd.f32 %v1400_v49, %v1626_v42  ;;  %vm940_vm2 = vcmp.ge.f32.partialorder %v908_v48, 0.0  ;;  %v972_v51 = vmul.f32 0.01, %v908_v48 }
 0x10d   : > { %v1006_v4 = vsel %vm942_vm4, %v910_v52, %v974_v1  ;;  %v975_v5 = vmul.f32 0.01, %v911_v62  ;;  %vm943_vm5 = vcmp.ge.f32.partialorder %v911_v62, 0.0 }
 0x10e   : > { %v1369_v53 = vpop.f32.mrb[4].mxu0  ;;  %v1004_v54 = vsel %vm940_vm2, %v908_v48, %v972_v51  ;;  %v973_v55 = vmul.f32 0.01, %v909_v50  ;;  %vm941_vm3 = vcmp.ge.f32.partialorder %v909_v50, 0.0 }
 0x10f   : > { %v1401_v56 = vadd.f32 %v1369_v53, %v1301_v28  ;;  %1036 = vxpose.xlu0.b32.start [1/16] (narrow) %v1004_v54, 8  ;;  %v758_v57 = vpop.f32.mrb[5].mxu0  ;;  %v1007_v14 = vsel %vm943_vm5, %v911_v62, %v975_v5 }
 0x110   : > { %v1402_v58 = vadd.f32 %v758_v57, %v401_v29  ;;  %v1370_v59 = vpop.f32.mrb[6].mxu0  ;;  %v1005_v0 = vsel %vm941_vm3, %v909_v50, %v973_v55 }
 0x111   : > { %v1403_v60 = vadd.f32 %v1370_v59, %v1302_v30  ;;  %v761_v61 = vpop.f32.mrb[7].mxu0  ;;  %v914_v16 = vadd.f32 %v1401_v56, %v1626_v42 }
 0x112   : > { %v1404_v63 = vadd.f32 %v761_v61, %v404_v31  ;;  %v912_v2 = vadd.f32 %v1402_v58, %v1626_v42 }
 0x113   : > { %1037 = vxpose.xlu0.b32.cont [2/16] (narrow) %v1005_v0, 8  ;;  %v915_v24 = vadd.f32 %v1403_v60, %v1626_v42  ;;  %v978_v29 = vmul.f32 0.01, %v914_v16  ;;  %vm946_vm8 = vcmp.ge.f32.partialorder %v914_v16, 0.0 }
 0x114   : > { %v913_v12 = vadd.f32 %v1404_v63, %v1626_v42  ;;  %v976_v15 = vmul.f32 0.01, %v912_v2  ;;  %vm944_vm6 = vcmp.ge.f32.partialorder %v912_v2, 0.0 }
 0x115   : > { %v979_v31 = vmul.f32 0.01, %v915_v24  ;;  %vm947_vm9 = vcmp.ge.f32.partialorder %v915_v24, 0.0 }
 0x116   : > { %v1373_v3 = vpop.f32.mrb[8].mxu0  ;;  %v1008_v18 = vsel %vm944_vm6, %v912_v2, %v976_v15  ;;  %v977_v19 = vmul.f32 0.01, %v913_v12  ;;  %vm945_vm7 = vcmp.ge.f32.partialorder %v913_v12, 0.0 }
 0x117   : > { %v1405_v6 = vadd.f32 %v1373_v3, %v1305_v32  ;;  %1038 = vxpose.xlu0.b32.cont [3/16] (narrow) %v1006_v4, 8  ;;  %v774_v7 = vpop.f32.mrb[9].mxu0  ;;  %v1011_v45 = vsel %vm947_vm9, %v915_v24, %v979_v31 }
 0x118   : > { %v1406_v8 = vadd.f32 %v774_v7, %v417_v33  ;;  %v1374_v9 = vpop.f32.mrb[10].mxu0  ;;  %v1009_v28 = vsel %vm945_vm7, %v913_v12, %v977_v19 }
 0x119   : > { %v1633_v10 = vadd.f32 %v1374_v9, %v1306_v34  ;;  %v777_v11 = vpop.f32.mrb[11].mxu0  ;;  %v1010_v34 = vsel %vm946_vm8, %v914_v16, %v978_v29  ;;  %v918_v52 = vadd.f32 %v1405_v6, %v1626_v42 }
 0x11a   : > { %v1408_v13 = vadd.f32 %v777_v11, %v420_v35  ;;  %v916_v30 = vadd.f32 %v1406_v8, %v1626_v42 }
 0x11b   : > { %1039 = vxpose.xlu0.b32.cont [4/16] (narrow) %v1007_v14, 8  ;;  %v919_v63 = vadd.f32 %v1633_v10, %v1626_v42  ;;  %v982_v7 = vmul.f32 0.01, %v918_v52  ;;  %vm950_vm14 = vcmp.ge.f32.partialorder %v918_v52, 0.0 }
 0x11c   : > { %v980_v46 = vmul.f32 0.01, %v916_v30  ;;  %v917_v47 = vadd.f32 %v1408_v13, %v1626_v42  ;;  %vm948_vm10 = vcmp.ge.f32.partialorder %v916_v30, 0.0 }
 0x11d   : > { %v983_v13 = vmul.f32 0.01, %v919_v63  ;;  %vm951_vm0 = vcmp.ge.f32.partialorder %v919_v63, 0.0 }
 0x11e   : > { %v1377_v17 = vpop.f32.mrb[12].mxu0  ;;  %v1012_v53 = vsel %vm948_vm10, %v916_v30, %v980_v46  ;;  %v981_v58 = vmul.f32 0.01, %v917_v47  ;;  %vm949_vm12 = vcmp.ge.f32.partialorder %v917_v47, 0.0 }
 0x11f   : > { %v1637_v20 = vadd.f32 %v1377_v17, %v1309_v36  ;;  %1040 = vxpose.xlu0.b32.cont [5/16] (narrow) %v1008_v18, 8  ;;  %v790_v21 = vpop.f32.mrb[13].mxu0  ;;  %v1014_v18 = vsel %vm950_vm14, %v918_v52, %v982_v7  ;;  %v1015_v30 = vsel %vm951_vm0, %v919_v63, %v983_v13 }
 0x120   : > { %v1639_v22 = vadd.f32 %v790_v21, %v433_v37  ;;  %v1378_v23 = vpop.f32.mrb[14].mxu0  ;;  %v1013_v9 = vsel %vm949_vm12, %v917_v47, %v981_v58 }
 0x121   : > { %v1642_v25 = vadd.f32 %v1378_v23, %v1310_v38  ;;  %v793_v26 = vpop.f32.mrb[15].mxu0 }
 0x122   : > { %v1645_v27 = vadd.f32 %v793_v26, %v1621_v39  ;;  %v920_v10 = vadd.f32 %v1639_v22, %v1626_v42 }
 0x123   : > { %1041 = vxpose.xlu0.b32.cont [6/16] (narrow) %v1009_v28, 8 }
 0x124   : > { %v921_v26 = vadd.f32 %v1645_v27, %v1626_v42  ;;  %vm952_vm2 = vcmp.ge.f32.partialorder %v920_v10, 0.0 }
 0x126   : > { %v1347_v32 = vpop.f32.mrb[16].mxu1  ;;  %v1381_v33 = vpop.f32.mrb[16].mxu0  ;;  %vm953_vm4 = vcmp.ge.f32.partialorder %v921_v26, 0.0 }
 0x127   : > { %v1413_v35 = vadd.f32 %v1381_v33, %v1347_v32  ;;  %v626_v36 = vpop.f32.mrb[17].mxu1  ;;  %1042 = vxpose.xlu0.b32.cont [7/16] (narrow) %v1010_v34, 8  ;;  %v806_v37 = vpop.f32.mrb[17].mxu0 }
 0x128   : > { %v1414_v38 = vadd.f32 %v806_v37, %v626_v36  ;;  %v1348_v40 = vpop.f32.mrb[18].mxu1  ;;  %v1382_v41 = vpop.f32.mrb[18].mxu0  ;;  %v984_v36 = vmul.f32 0.01, %v920_v10 }
 0x129   : > { %v1415_v39 = vadd.f32 %v1382_v41, %v1348_v40  ;;  %v629_v43 = vpop.f32.mrb[19].mxu1  ;;  %v809_v44 = vpop.f32.mrb[19].mxu0  ;;  %v926_v54 = vadd.f32 %v1413_v35, %v1626_v42 }
 0x12a   : > { %v924_v48 = vadd.f32 %v1414_v38, %v1626_v42  ;;  %v1416_v49 = vadd.f32 %v809_v44, %v629_v43  ;;  %v1016_v44 = vsel %vm952_vm2, %v920_v10, %v984_v36 }
 0x12b   : > { %1043 = vxpose.xlu0.b32.cont [8/16] (narrow) %v1011_v45, 8  ;;  %v927_v3 = vadd.f32 %v1415_v39, %v1626_v42  ;;  %v990_v12 = vmul.f32 0.01, %v926_v54  ;;  %vm958_vm15 = vcmp.ge.f32.partialorder %v926_v54, 0.0  ;;  %v922_v39 = vadd.f32 %v1637_v20, %v1626_v42 }
 0x12c   : > { %v925_v50 = vadd.f32 %v1416_v49, %v1626_v42  ;;  %vm956_vm11 = vcmp.ge.f32.partialorder %v924_v48, 0.0  ;;  %v988_v51 = vmul.f32 0.01, %v924_v48  ;;  %v985_v45 = vmul.f32 0.01, %v921_v26 }
 0x12d   : > { %v991_v14 = vmul.f32 0.01, %v927_v3  ;;  %v1022_v19 = vsel %vm958_vm15, %v926_v54, %v990_v12  ;;  %vm959_vm1 = vcmp.ge.f32.partialorder %v927_v3, 0.0  ;;  %v923_v20 = vadd.f32 %v1642_v25, %v1626_v42 }
 0x12e   : > { %v1351_v55 = vpop.f32.mrb[20].mxu1  ;;  %v1385_v56 = vpop.f32.mrb[20].mxu0  ;;  %v1020_v57 = vsel %vm956_vm11, %v924_v48, %v988_v51  ;;  %v989_v59 = vmul.f32 0.01, %v925_v50  ;;  %vm957_vm13 = vcmp.ge.f32.partialorder %v925_v50, 0.0  ;;  %v1017_v63 = vsel %vm953_vm4, %v921_v26, %v985_v45 }
 0x12f   : > { %v1653_v60 = vadd.f32 %v1385_v56, %v1351_v55  ;;  %v642_v61 = vpop.f32.mrb[21].mxu1  ;;  %1044 = vxpose.xlu0.b32.cont [9/16] (narrow) %v1012_v53, 8  ;;  %1068 = vxpose.xlu1.b32.start [1/16] (narrow) %v1020_v57, 8  ;;  %v822_v62 = vpop.f32.mrb[21].mxu0  ;;  %v1023_v35 = vsel %vm959_vm1, %v927_v3, %v991_v14  ;;  %v986_v57 = vmul.f32 0.01, %v922_v39 }
 0x130   : > { %v1418_v0 = vadd.f32 %v822_v62, %v642_v61  ;;  %v1352_v1 = vpop.f32.mrb[22].mxu1  ;;  %v1386_v2 = vpop.f32.mrb[22].mxu0  ;;  %v1021_v11 = vsel %vm957_vm13, %v925_v50, %v989_v59  ;;  %vm954_vm6 = vcmp.ge.f32.partialorder %v922_v39, 0.0  ;;  %v987_v7 = vmul.f32 0.01, %v923_v20 }
 0x131   : > { %v1658_v4 = vadd.f32 %v1386_v2, %v1352_v1  ;;  %v645_v5 = vpop.f32.mrb[23].mxu1  ;;  %v825_v6 = vpop.f32.mrb[23].mxu0  ;;  %v930_v46 = vadd.f32 %v1653_v60, %v1626_v42  ;;  %vm955_vm8 = vcmp.ge.f32.partialorder %v923_v20, 0.0 }
 0x132   : > { %v1420_v8 = vadd.f32 %v825_v6, %v645_v5  ;;  %v928_v15 = vadd.f32 %v1418_v0, %v1626_v42  ;;  %v1018_v5 = vsel %vm954_vm6, %v922_v39, %v986_v57 }
 0x133   : > { %1045 = vxpose.xlu0.b32.cont [10/16] (narrow) %v1013_v9, 8  ;;  %1069 = vxpose.xlu1.b32.cont [2/16] (narrow) %v1021_v11, 8  ;;  %v931_v58 = vadd.f32 %v1658_v4, %v1626_v42  ;;  %v994_v3 = vmul.f32 0.01, %v930_v46  ;;  %vm962_vm7 = vcmp.ge.f32.partialorder %v930_v46, 0.0  ;;  %v1019_v9 = vsel %vm955_vm8, %v923_v20, %v987_v7 }
 0x134   : > { %v929_v37 = vadd.f32 %v1420_v8, %v1626_v42  ;;  %v992_v40 = vmul.f32 0.01, %v928_v15  ;;  %vm960_vm3 = vcmp.ge.f32.partialorder %v928_v15, 0.0 }
 0x135   : > { %v1026_v6 = vsel %vm962_vm7, %v930_v46, %v994_v3  ;;  %v995_v8 = vmul.f32 0.01, %v931_v58  ;;  %vm963_vm9 = vcmp.ge.f32.partialorder %v931_v58, 0.0 }
 0x136   : > { %v1355_v16 = vpop.f32.mrb[24].mxu1  ;;  %v1389_v17 = vpop.f32.mrb[24].mxu0  ;;  %v1024_v49 = vsel %vm960_vm3, %v928_v15, %v992_v40  ;;  %v993_v50 = vmul.f32 0.01, %v929_v37  ;;  %vm961_vm5 = vcmp.ge.f32.partialorder %v929_v37, 0.0 }
 0x137   : > { %v1421_v21 = vadd.f32 %v1389_v17, %v1355_v16  ;;  %v658_v23 = vpop.f32.mrb[25].mxu1  ;;  %1046 = vxpose.xlu0.b32.cont [11/16] (narrow) %v1014_v18, 8  ;;  %1070 = vxpose.xlu1.b32.cont [3/16] (narrow) %v1022_v19, 8  ;;  %v838_v24 = vpop.f32.mrb[25].mxu0  ;;  %v1027_v11 = vsel %vm963_vm9, %v931_v58, %v995_v8 }
 0x138   : > { %v1422_v28 = vadd.f32 %v838_v24, %v658_v23  ;;  %v1356_v22 = vpop.f32.mrb[26].mxu1  ;;  %v1390_v29 = vpop.f32.mrb[26].mxu0  ;;  %v1025_v2 = vsel %vm961_vm5, %v929_v37, %v993_v50 }
 0x139   : > { %v1667_v31 = vadd.f32 %v1421_v21, %v1626_v42  ;;  %v1423_v32 = vadd.f32 %v1390_v29, %v1356_v22  ;;  %v661_v33 = vpop.f32.mrb[27].mxu1  ;;  %v841_v34 = vpop.f32.mrb[27].mxu0 }
 0x13a   : > { %v932_v38 = vadd.f32 %v1422_v28, %v1626_v42  ;;  %v1424_v27 = vadd.f32 %v841_v34, %v661_v33 }
 0x13b   : > { %v1673_v41 = vadd.f32 %v1423_v32, %v1626_v42  ;;  %1047 = vxpose.xlu0.b32.cont [12/16] (narrow) %v1015_v30, 8  ;;  %1071 = vxpose.xlu1.b32.cont [4/16] (narrow) %v1023_v35, 8  ;;  %vm966_vm12 = vcmp.ge.f32.partialorder %v1667_v31, 0.0 }
 0x13c   : > { %v933_v43 = vadd.f32 %v1424_v27, %v1626_v42  ;;  %v996_v12 = vmul.f32 0.01, %v932_v38  ;;  %vm964_vm10 = vcmp.ge.f32.partialorder %v932_v38, 0.0 }
 0x13d   : > { %v999_v16 = vmul.f32 0.01, %v1673_v41  ;;  %vm967_vm13 = vcmp.ge.f32.partialorder %v1673_v41, 0.0 }
 0x13e   : > { %v1359_v47 = vpop.f32.mrb[28].mxu1  ;;  %v1393_v48 = vpop.f32.mrb[28].mxu0  ;;  %v1028_v10 = vsel %vm964_vm10, %v932_v38, %v996_v12  ;;  %v997_v13 = vmul.f32 0.01, %v933_v43  ;;  %vm965_vm11 = vcmp.ge.f32.partialorder %v933_v43, 0.0 }
 0x13f   : > { %v1425_v51 = vadd.f32 %v1393_v48, %v1359_v47  ;;  %v674_v52 = vpop.f32.mrb[29].mxu1  ;;  %1048 = vxpose.xlu0.b32.cont [13/16] (narrow) %v1016_v44, 8  ;;  %1072 = vxpose.xlu1.b32.cont [5/16] (narrow) %v1024_v49, 8  ;;  %v854_v53 = vpop.f32.mrb[29].mxu0  ;;  %v1031_v17 = vsel %vm967_vm13, %v1673_v41, %v999_v16 }
 0x140   : > { %v1426_v54 = vadd.f32 %v854_v53, %v674_v52  ;;  %v1360_v55 = vpop.f32.mrb[30].mxu1  ;;  %v1394_v56 = vpop.f32.mrb[30].mxu0  ;;  %v1029_v14 = vsel %vm965_vm11, %v933_v43, %v997_v13 }
 0x141   : > { %v938_v59 = vadd.f32 %v1425_v51, %v1626_v42  ;;  %v1427_v60 = vadd.f32 %v1394_v56, %v1360_v55  ;;  %v677_v61 = vpop.f32.mrb[31].mxu1  ;;  %v857_v62 = vpop.f32.mrb[31].mxu0 }
 0x142   : > { %v936_v0 = vadd.f32 %v1426_v54, %v1626_v42  ;;  %v1428_v1 = vadd.f32 %v857_v62, %v677_v61 }
 0x143   : > { %v939_v25 = vadd.f32 %v1427_v60, %v1626_v42  ;;  %1049 = vxpose.xlu0.b32.cont [14/16] (narrow) %v1017_v63, 8  ;;  %1073 = vxpose.xlu1.b32.cont [6/16] (narrow) %v1025_v2, 8  ;;  %v1002_v24 = vmul.f32 0.01, %v938_v59  ;;  %vm970_vm0 = vcmp.ge.f32.partialorder %v938_v59, 0.0 }
 0x144   : > { %v937_v4 = vadd.f32 %v1428_v1, %v1626_v42  ;;  %v998_v42 = vmul.f32 0.01, %v1667_v31  ;;  %v1000_v18 = vmul.f32 0.01, %v936_v0  ;;  %vm968_vm14 = vcmp.ge.f32.partialorder %v936_v0, 0.0 }
 0x145   : > { %v1034_v26 = vsel %vm970_vm0, %v938_v59, %v1002_v24  ;;  %v1003_v28 = vmul.f32 0.01, %v939_v25  ;;  %vm971_vm1 = vcmp.ge.f32.partialorder %v939_v25, 0.0 }
 0x146   : > { %v1030_v15 = vsel %vm966_vm12, %v1667_v31, %v998_v42  ;;  %v1032_v19 = vsel %vm968_vm14, %v936_v0, %v1000_v18  ;;  %v1001_v21 = vmul.f32 0.01, %v937_v4  ;;  %vm969_vm15 = vcmp.ge.f32.partialorder %v937_v4, 0.0 }
 0x147   : > { %1050 = vxpose.xlu0.b32.cont [15/16] (narrow) %v1018_v5, 8  ;;  %1074 = vxpose.xlu1.b32.cont [7/16] (narrow) %v1026_v6, 8  ;;  %v1035_v22 = vsel %vm971_vm1, %v939_v25, %v1003_v28 }
 0x148   : > { %v1033_v23 = vsel %vm969_vm15, %v937_v4, %v1001_v21 }
 0x14b   : > { %1051 = vxpose.xlu0.b32.end [16/16] (narrow) %v1019_v9, 8  ;;  %1075 = vxpose.xlu1.b32.cont [8/16] (narrow) %v1027_v11, 8 }
 0x14f   : > { %1076 = vxpose.xlu1.b32.cont [9/16] (narrow) %v1028_v10, 8 }
 0x153   : > { %1077 = vxpose.xlu1.b32.cont [10/16] (narrow) %v1029_v14, 8 }
 0x157   : > { %1078 = vxpose.xlu1.b32.cont [11/16] (narrow) %v1030_v15, 8 }
 0x15b   : > { %1079 = vxpose.xlu1.b32.cont [12/16] (narrow) %v1031_v17, 8 }
 0x15f   : > { %1080 = vxpose.xlu1.b32.cont [13/16] (narrow) %v1032_v19, 8 }
 0x163   : > { %1081 = vxpose.xlu1.b32.cont [14/16] (narrow) %v1033_v23, 8 }
 0x167   : > { %1082 = vxpose.xlu1.b32.cont [15/16] (narrow) %v1034_v26, 8 }
 0x16b   : > { %1083 = vxpose.xlu1.b32.end [16/16] (narrow) %v1035_v22, 8 }
 0x18f   : > { %v1052_v29 = vpop.trf.xlu0 }
 0x190   : > { %1100 = vst [vmem:[%s170_s29] sm:$0xff] %v1052_v29 }
 0x1af   : > { %v1084_v30 = vpop.trf.xlu1 }
 0x1b0   : > { %1101 = vst [vmem:[%s170_s29 + $0x8] sm:$0xff] %v1084_v30 }
 0x1b1 PF: > { %s13_s12 = sadd.s32 1, %s1501_s12  }
 0x1b2   : > { %p10_p4 = scmp.ge.s32.totalorder %s13_s12, 4  }
 0x1b4   :  { %12 = sbr.rel (!%p10_p4) target bundleno = 1 (0x1), region = 64 }

</bundles_post_ra>
